<compile_context>
chip_gen: v5e
topology: v5e:2x2
jax: 0.10.0
libtpu: 0.0.40
codegen_flags: <defaults>
</compile_context>

<pallas_src>
import functools
import math

import jax
import jax.numpy as jnp
from jax.experimental import pallas as pl
from jax.experimental.pallas import tpu as pltpu

_NEG_INF = -1e9                      # finite stand-in for float('-inf') in the causal mask
_LN_EPS = 1e-5                       # torch.nn.LayerNorm default eps
_HIGHEST = jax.lax.Precision.HIGHEST  # reference-path matmul precision


# -----------------------------------------------------------------------------
# Kernels
# -----------------------------------------------------------------------------
def _pe_kernel(x_ref, pe_ref, o_ref, *, scale):
    # Fused embedding scale + positional-encoding add (dropout in eval mode = identity).
    o_ref[...] = x_ref[...] * scale + pe_ref[...]


def _pe_dropout_kernel(x_ref, pe_ref, bits_ref, o_ref, *, scale, threshold, inv_keep):
    # Fused scale + PE add + inverted dropout. Mask is a single integer threshold
    # compare on uniform uint32 bits (no float reconstruction / bit twiddling).
    y = x_ref[...] * scale + pe_ref[...]
    keep = bits_ref[...] < jnp.uint32(threshold)
    o_ref[...] = jnp.where(keep, y * inv_keep, jnp.zeros_like(y))


def _linear_kernel(x_ref, w_ref, b_ref, o_ref, *, relu):
    y = jnp.dot(x_ref[...], w_ref[...], preferred_element_type=jnp.float32)
    y = y + b_ref[...]
    if relu:
        y = jnp.maximum(y, 0.0)
    o_ref[...] = y.astype(o_ref.dtype)


def _attention_kernel(q_ref, k_ref, v_ref, mask_ref, o_ref, *, scale):
    # q/k/v: (B*H, S, hd), mask: (S, S) additive causal mask.
    q = q_ref[...]
    k = k_ref[...]
    v = v_ref[...]
    s = jnp.einsum("bqd,bkd->bqk", q, k, preferred_element_type=jnp.float32) * scale
    s = s + mask_ref[...][None, :, :]
    m = jnp.max(s, axis=-1, keepdims=True)
    p = jnp.exp(s - m)
    p = p / jnp.sum(p, axis=-1, keepdims=True)
    o = jnp.einsum("bqk,bkd->bqd", p, v, preferred_element_type=jnp.float32)
    o_ref[...] = o.astype(o_ref.dtype)


def _add_layernorm_kernel(x_ref, y_ref, g_ref, b_ref, o_ref):
    z = x_ref[...] + y_ref[...]
    mu = jnp.mean(z, axis=-1, keepdims=True)
    zc = z - mu
    var = jnp.mean(zc * zc, axis=-1, keepdims=True)
    inv = jax.lax.rsqrt(var + _LN_EPS)
    o_ref[...] = (zc * inv * g_ref[...] + b_ref[...]).astype(o_ref.dtype)


def _head_kernel(x_ref, w1_ref, b1_ref, w2_ref, b2_ref, o_ref):
    # output.mean(axis=1) over batch, then Linear(.,128)+ReLU, then classifier Linear.
    xm = jnp.mean(x_ref[...], axis=1)                       # (S, B, D) -> (S, D)
    h = jnp.dot(xm, w1_ref[...], preferred_element_type=jnp.float32) + b1_ref[...]
    h = jnp.maximum(h, 0.0)
    o = jnp.dot(h, w2_ref[...], preferred_element_type=jnp.float32) + b2_ref[...]
    o_ref[...] = o.astype(o_ref.dtype)


# -----------------------------------------------------------------------------
# Small pallas_call helpers
# -----------------------------------------------------------------------------
def _full_spec(shape):
    nd = len(shape)
    return pl.BlockSpec(shape, lambda i, _nd=nd: (0,) * _nd)


def _pallas_single_block(kernel, out_shape, *inputs):
    # Small, fully-resident operands: one grid step covering the whole arrays
    # (amortizes the ~0.35us per-step overhead; blocks equal full array dims).
    return pl.pallas_call(
        kernel,
        out_shape=out_shape,
        grid=(1,),
        in_specs=[_full_spec(x.shape) for x in inputs],
        out_specs=_full_spec(out_shape.shape),
        compiler_params=pltpu.CompilerParams(dimension_semantics=("arbitrary",)),
    )(*inputs)


def linear(x, w, b, *, relu=False):
    m, k = x.shape
    k2, n = w.shape
    assert k == k2
    out_shape = jax.ShapeDtypeStruct((m, n), x.dtype)
    return _pallas_single_block(
        functools.partial(_linear_kernel, relu=relu), out_shape, x, w, b.reshape(1, n))


def attention(q, k, v, mask, *, scale):
    out_shape = jax.ShapeDtypeStruct(q.shape, q.dtype)
    return _pallas_single_block(
        functools.partial(_attention_kernel, scale=scale), out_shape, q, k, v, mask)


def add_layernorm(x, y, gamma, beta):
    d = x.shape[-1]
    out_shape = jax.ShapeDtypeStruct(x.shape, x.dtype)
    return _pallas_single_block(
        _add_layernorm_kernel, out_shape, x, y, gamma.reshape(1, d), beta.reshape(1, d))


def classifier_head(x, w1, b1, w2, b2):
    s = x.shape[0]
    n_cls = w2.shape[1]
    out_shape = jax.ShapeDtypeStruct((s, n_cls), x.dtype)
    return _pallas_single_block(
        _head_kernel, out_shape, x, w1, b1.reshape(1, -1), w2, b2.reshape(1, -1))


# -----------------------------------------------------------------------------
# PositionalEncoding: buffer construction + fused forward
# -----------------------------------------------------------------------------
def make_positional_encoding(d_model, max_len=5000, dtype=jnp.float32):
    position = jnp.arange(max_len, dtype=jnp.float32)[:, None]                 # (L, 1)
    div_term = jnp.exp(jnp.arange(0, d_model, 2, dtype=jnp.float32)
                       * (-math.log(10000.0) / d_model))                        # (D/2,)
    pe = jnp.zeros((max_len, d_model), jnp.float32)
    pe = pe.at[:, 0::2].set(jnp.sin(position * div_term))
    pe = pe.at[:, 1::2].set(jnp.cos(position * div_term))
    # torch: pe.unsqueeze(0).transpose(0, 1) -> (max_len, 1, d_model)
    return pe[:, None, :].astype(dtype)


def _choose_seq_tile(seq_len, row_bytes, target_bytes=2 * 1024 * 1024):
    # ~2 MiB f32 blocks: large enough to approach the HBM roofline, small enough that
    # double-buffered (x, pe, bits, out) stays far below the 32 MiB scoped-VMEM default
    # (and fits v7x's 64 MiB physical VMEM with headroom).
    ts = target_bytes // max(row_bytes, 1)
    if ts >= seq_len:
        return seq_len
    return max(8, (ts // 8) * 8)


def positional_encoding_forward(x, pe, *, scale=1.0, dropout_p=0.1,
                                training=False, rng=None):
    """Fused  x*scale + pe[:S]  followed by (optional, inverted) dropout.

    x: (S, B, D), pe: (max_len, 1, D). Returns (S, B, D) in x.dtype.
    """
    s, b, d = x.shape
    pe_s = pe[:s].astype(x.dtype)                      # pre-cast the table once

    if d % 128 == 0:
        # d_model already lane-dense: keep the (S, 1, D) broadcast table.
        x_in = x
        pe_in = pe_s
        ts = _choose_seq_tile(s, b * d * x.dtype.itemsize)
        x_spec = pl.BlockSpec((ts, b, d), lambda i: (i, 0, 0))
        pe_spec = pl.BlockSpec((ts, 1, d), lambda i: (i, 0, 0))
        bits_spec = x_spec
        bits_shape = (s, b, d)
    else:
        # d_model < 128: present a lane-dense last dim by flattening (B, D) -> B*D and
        # tiling the PE buffer over batch (for a real model this tiled table is built once).
        x_in = x.reshape(s, b * d)
        pe_in = jnp.broadcast_to(pe_s, (s, b, d)).reshape(s, b * d)
        ts = _choose_seq_tile(s, b * d * x.dtype.itemsize)
        x_spec = pl.BlockSpec((ts, b * d), lambda i: (i, 0))
        pe_spec = x_spec
        bits_spec = x_spec
        bits_shape = (s, b * d)

    grid = (pl.cdiv(s, ts),)
    out_shape = jax.ShapeDtypeStruct(x_in.shape, x.dtype)

    if (not training) or dropout_p == 0.0:
        out = pl.pallas_call(
            functools.partial(_pe_kernel, scale=scale),
            out_shape=out_shape,
            grid=grid,
            in_specs=[x_spec, pe_spec],
            out_specs=x_spec,
            compiler_params=pltpu.CompilerParams(dimension_semantics=("parallel",)),
        )(x_in, pe_in)
        return out.reshape(s, b, d)

    if rng is None:
        rng = jax.random.PRNGKey(0)
    keep_prob = 1.0 - float(dropout_p)
    threshold = min(int(round(keep_prob * 2.0 ** 32)), 2 ** 32 - 1)
    # TODO(synk): on real hardware the bits could be drawn in-kernel with
    # pltpu.prng_seed/prng_random_bits (saves one HBM read per element); interpret mode
    # cannot lower those primitives, so uniform uint32 bits are streamed in instead.
    bits = jax.random.bits(rng, bits_shape, dtype=jnp.uint32)
    out = pl.pallas_call(
        functools.partial(_pe_dropout_kernel, scale=scale,
                          threshold=threshold, inv_keep=1.0 / keep_prob),
        out_shape=out_shape,
        grid=grid,
        in_specs=[x_spec, pe_spec, bits_spec],
        out_specs=x_spec,
        compiler_params=pltpu.CompilerParams(dimension_semantics=("parallel",)),
    )(x_in, pe_in, bits)
    return out.reshape(s, b, d)


# -----------------------------------------------------------------------------
# TransformerModel: params + forward (Pallas) + plain-JAX reference
# -----------------------------------------------------------------------------
def causal_mask(s, dtype=jnp.float32):
    idx = jnp.arange(s)
    return jnp.where(idx[None, :] <= idx[:, None], 0.0, _NEG_INF).astype(dtype)


def init_params(key, d_model, nhead, nhid, nlayers, n_classes,
                *, max_len=5000, dtype=jnp.float32):
    def dense(k, fan_in, fan_out):
        w = jax.random.normal(k, (fan_in, fan_out), dtype) * (1.0 / math.sqrt(fan_in))
        return w, jnp.zeros((fan_out,), dtype)

    keys = iter(jax.random.split(key, 4 * nlayers + 2))
    layers = []
    for _ in range(nlayers):
        w_qkv, b_qkv = dense(next(keys), d_model, 3 * d_model)
        w_o, b_o = dense(next(keys), d_model, d_model)
        w_ff1, b_ff1 = dense(next(keys), d_model, nhid)
        w_ff2, b_ff2 = dense(next(keys), nhid, d_model)
        layers.append(dict(
            w_qkv=w_qkv, b_qkv=b_qkv, w_o=w_o, b_o=b_o,
            w_ff1=w_ff1, b_ff1=b_ff1, w_ff2=w_ff2, b_ff2=b_ff2,
            g1=jnp.ones((d_model,), dtype), be1=jnp.zeros((d_model,), dtype),
            g2=jnp.ones((d_model,), dtype), be2=jnp.zeros((d_model,), dtype)))
    w_lin, b_lin = dense(next(keys), d_model, 128)
    w_cls, b_cls = dense(next(keys), 128, n_classes)
    return dict(d_model=d_model, nhead=nhead,
                pe=make_positional_encoding(d_model, max_len, dtype),
                layers=layers, w_lin=w_lin, b_lin=b_lin, w_cls=w_cls, b_cls=b_cls)


def encoder_layer_forward(x, mask, p, *, nhead):
    s, b, d = x.shape
    hd = d // nhead
    x2 = x.reshape(s * b, d)

    qkv = linear(x2, p["w_qkv"], p["b_qkv"])                 # (S*B, 3D)
    q, k, v = qkv[:, :d], qkv[:, d:2 * d], qkv[:, 2 * d:]

    def to_heads(t):  # (S*B, D) -> (B*H, S, hd)   [layout plumbing outside the kernel]
        return (t.reshape(s, b, nhead, hd)
                 .transpose(1, 2, 0, 3)
                 .reshape(b * nhead, s, hd))

    attn = attention(to_heads(q), to_heads(k), to_heads(v), mask,
                     scale=1.0 / math.sqrt(hd))              # (B*H, S, hd)
    attn = (attn.reshape(b, nhead, s, hd)
                .transpose(2, 0, 1, 3)
                .reshape(s * b, d))
    attn = linear(attn, p["w_o"], p["b_o"])

    # TODO(synk): encoder-layer dropouts (attention / FFN) are eval-mode identity here.
    x2 = add_layernorm(x2, attn, p["g1"], p["be1"])
    ff = linear(x2, p["w_ff1"], p["b_ff1"], relu=True)
    ff = linear(ff, p["w_ff2"], p["b_ff2"])
    x2 = add_layernorm(x2, ff, p["g2"], p["be2"])
    return x2.reshape(s, b, d)


def transformer_model_forward(params, src, *, dropout_p=0.5, training=False, rng=None):
    src = src.astype(jnp.float32)
    s = src.shape[0]
    d = params["d_model"]
    mask = causal_mask(s)
    x = positional_encoding_forward(src, params["pe"], scale=math.sqrt(d),
                                    dropout_p=dropout_p, training=training, rng=rng)
    for layer_p in params["layers"]:
        x = encoder_layer_forward(x, mask, layer_p, nhead=params["nhead"])
    return classifier_head(x, params["w_lin"], params["b_lin"],
                           params["w_cls"], params["b_cls"])


# ---- plain-JAX reference (eval mode) for correctness checking -----------------
def _ref_linear(x, w, b):
    return jnp.dot(x, w, precision=_HIGHEST) + b


def _ref_layernorm(z, g, be):
    mu = jnp.mean(z, axis=-1, keepdims=True)
    var = jnp.mean((z - mu) ** 2, axis=-1, keepdims=True)
    return (z - mu) * jax.lax.rsqrt(var + _LN_EPS) * g + be


def transformer_model_ref(params, src):
    src = src.astype(jnp.float32)
    s, b, d = src.shape
    nhead = params["nhead"]
    hd = d // nhead
    mask = causal_mask(s)

    x = src * math.sqrt(d) + params["pe"][:s]
    for p in params["layers"]:
        x2 = x.reshape(s * b, d)
        qkv = _ref_linear(x2, p["w_qkv"], p["b_qkv"])
        q, k, v = jnp.split(qkv, 3, axis=-1)

        def heads(t):  # (S*B, D) -> (B, H, S, hd)
            return t.reshape(s, b, nhead, hd).transpose(1, 2, 0, 3)

        sc = (jnp.einsum("bhqd,bhkd->bhqk", heads(q), heads(k), precision=_HIGHEST)
              / math.sqrt(hd)) + mask
        w_attn = jax.nn.softmax(sc, axis=-1)
        o = jnp.einsum("bhqk,bhkd->bhqd", w_attn, heads(v), precision=_HIGHEST)
        o = o.transpose(2, 0, 1, 3).reshape(s * b, d)
        o = _ref_linear(o, p["w_o"], p["b_o"])
        x2 = _ref_layernorm(x2 + o, p["g1"], p["be1"])
        ff = jnp.maximum(_ref_linear(x2, p["w_ff1"], p["b_ff1"]), 0.0)
        ff = _ref_linear(ff, p["w_ff2"], p["b_ff2"])
        x2 = _ref_layernorm(x2 + ff, p["g2"], p["be2"])
        x = x2.reshape(s, b, d)

    xm = jnp.mean(x, axis=1)
    h = jnp.maximum(_ref_linear(xm, params["w_lin"], params["b_lin"]), 0.0)
    return _ref_linear(h, params["w_cls"], params["b_cls"])


# -----------------------------------------------------------------------------
# Main
# -----------------------------------------------------------------------------
if __name__ == "__main__":
    S, B = 8, 4
    NINP, NHEAD, NHID, NLAYERS, NCLASSES = 32, 2, 64, 2, 10
    MAX_LEN = 64

    root = jax.random.PRNGKey(0)
    k_src, k_par, k_drop = jax.random.split(root, 3)
    src = jax.random.normal(k_src, (S, B, NINP), jnp.float32)
    params = init_params(k_par, NINP, NHEAD, NHID, NLAYERS, NCLASSES, max_len=MAX_LEN)

    # Full TransformerModel forward (eval mode: all dropout = identity), Pallas path.
    out = jax.block_until_ready(transformer_model_forward(params, src, training=False))
    assert out.shape == (S, NCLASSES) and out.dtype == jnp.float32

    ref = jax.block_until_ready(transformer_model_ref(params, src))
    assert jnp.allclose(out, ref, atol=2e-3, rtol=2e-3), \
        float(jnp.max(jnp.abs(out - ref)))

    # PositionalEncoding kernel: eval path (exact) and training dropout path.
    scale = math.sqrt(NINP)
    pe_eval = jax.block_until_ready(
        positional_encoding_forward(src, params["pe"], scale=scale,
                                    dropout_p=0.5, training=False))
    y = src * scale + params["pe"][:S]
    assert jnp.allclose(pe_eval, y, atol=1e-5, rtol=1e-5)

    drop_p = 0.5
    pe_train = jax.block_until_ready(
        positional_encoding_forward(src, params["pe"], scale=scale,
                                    dropout_p=drop_p, training=True, rng=k_drop))
    kept_val = y / (1.0 - drop_p)
    ok = (jnp.isclose(pe_train, 0.0, atol=1e-6)
          | jnp.isclose(pe_train, kept_val, rtol=1e-5, atol=1e-5))
    assert bool(jnp.all(ok))
    dropped = float(jnp.mean((pe_train == 0.0).astype(jnp.float32)))
    assert 0.3 < dropped < 0.7, dropped

    print("KERNEL_OK")
</pallas_src>

<mosaic_0001>
module attributes {stable_mosaic.version = 11 : i64} {
  func.func @_pe_kernel(%arg0: i32, %arg1: memref<8x128xf32, #tpu.memory_space<vmem>>, %arg2: memref<8x128xf32, #tpu.memory_space<vmem>>, %arg3: memref<8x128xf32, #tpu.memory_space<vmem>>) attributes {dimension_semantics = [#tpu.dimension_semantics<parallel>], iteration_bounds = array<i64: 1>, scalar_prefetch = 0 : i64, scratch_operands = 0 : i64, tpu.core_type = #tpu.core_type<tc>, window_params = [{transform_indices = @transform_0, window_bounds = array<i64: 8, 128>}, {transform_indices = @transform_1, window_bounds = array<i64: 8, 128>}, {transform_indices = @transform_2, window_bounds = array<i64: 8, 128>}]} {
    %c0 = arith.constant 0 : index
    %c0_0 = arith.constant 0 : index
    %0 = vector.load %arg1[%c0, %c0_0] : memref<8x128xf32, #tpu.memory_space<vmem>>, vector<8x128xf32>
    %cst = arith.constant 5.65685415 : f32
    %1 = vector.broadcast %cst : f32 to vector<8x128xf32>
    %2 = arith.mulf %0, %1 : vector<8x128xf32>
    %c0_1 = arith.constant 0 : index
    %c0_2 = arith.constant 0 : index
    %3 = vector.load %arg2[%c0_1, %c0_2] : memref<8x128xf32, #tpu.memory_space<vmem>>, vector<8x128xf32>
    %4 = arith.addf %2, %3 : vector<8x128xf32>
    %c0_3 = arith.constant 0 : index
    %c0_4 = arith.constant 0 : index
    %5 = vector.load %arg3[%c0_3, %c0_4] : memref<8x128xf32, #tpu.memory_space<vmem>>, vector<8x128xf32>
    tpu.vector_store %arg3[%c0_3, %c0_4], %4 {strides = array<i32>} : memref<8x128xf32, #tpu.memory_space<vmem>>, vector<8x128xf32>,
    return
  }
  func.func @transform_0(%arg0: i32) -> (i32, i32) {
    %c0_i32 = arith.constant 0 : i32
    %c0_i32_0 = arith.constant 0 : i32
    return %arg0, %c0_i32 : i32, i32
  }
  func.func @transform_1(%arg0: i32) -> (i32, i32) {
    %c0_i32 = arith.constant 0 : i32
    %c0_i32_0 = arith.constant 0 : i32
    return %arg0, %c0_i32 : i32, i32
  }
  func.func @transform_2(%arg0: i32) -> (i32, i32) {
    %c0_i32 = arith.constant 0 : i32
    %c0_i32_0 = arith.constant 0 : i32
    return %arg0, %c0_i32 : i32, i32
  }
}

</mosaic_0001>

<bundles_post_ra>
// kernel: tpu_custom_call.1
= control target key start
LH: loop header
LB: loop body
LE: loop exit
PB: predicated region body
PF: predicated region fallthrough
CT: control target
= control target key end

     0   :  { %7 = vsyncpa [#allocation3], 0  ;;  %s171_s0 = inlined_call_operand.hbm [shape: f32[8,128], index: 0, kind: input, shape index: {}]   ;;  %s172_s1 = inlined_call_operand.hbm [shape: f32[8,128], index: 1, kind: input, shape index: {}]   ;;  %s173_s2 = inlined_call_operand.hbm [shape: f32[8,128], index: 2, kind: output, shape index: {}]  }
   0x1   :  { %8 = vsyncpa [#allocation6], 0 }
   0x2   :  { %9 = vsyncpa [#allocation4], 0  ;;  %s15_s11 = sshll.u32 %s171_s0, 4  ;;  %s144_s12 = smov [#allocation2]   ;;  %s16_s11 = int_to_ptr.hbm [resolvable:$true] %s15_s11 }
   0x3   :  { %s17_s13 = sshll.u32 %s144_s12, 4  ;;  %s26_s16 = sshll.u32 %s172_s1, 4  ;;  %s18_s13 = int_to_ptr.vmem [resolvable:$true] %s17_s13  ;;  %s27_s16 = int_to_ptr.hbm [resolvable:$true] %s26_s16 }
   0x4   :  { %20 = dma.hbm_to_vmem [thread:$0]  %s16_s11, 128, %s18_s13, [#allocation3]  }
   0x5   :  { %s145_s17 = smov [#allocation5]  }
   0x6   :  { %s28_s18 = sshll.u32 %s145_s17, 4  ;;  %s29_s18 = int_to_ptr.vmem [resolvable:$true] %s28_s18 }
   0x7   :  { %31 = dma.hbm_to_vmem [thread:$0]  %s27_s16, 128, %s29_s18, [#allocation6]  }
   0x8   :  { %138 = dma.done.wait [#allocation3], 128  }
   0x9   :  { %139 = vsyncadd [#allocation3], 4294967168 }
   0xa   :  { %140 = dma.done.wait [#allocation6], 128  }
   0xb   :  { %141 = vsyncadd [#allocation6], 4294967168  ;;  %v40_v0 = vld [vmem:[#allocation2] sm:$0xff]  ;;  %v42_v1 = vld [vmem:[#allocation5] sm:$0xff]  ;;  %s146_s0 = smov [#allocation7]   ;;  %s52_s22 = sshll.u32 %s173_s2, 4  ;;  %s53_s22 = int_to_ptr.hbm [resolvable:$true] %s52_s22 }
   0xc   :  { %s50_s19 = sshll.u32 %s146_s0, 4  ;;  %v41_v2 = vmul.f32 5.656854, %v40_v0  ;;  %s51_s19 = int_to_ptr.vmem [resolvable:$true] %s50_s19 }
   0xe   :  { %v43_v3 = vadd.f32 %v42_v1, %v41_v2 }
  0x10   :  { %44 = vst [vmem:[#allocation7] sm:$0xff] %v43_v3 }
  0x11   :  { %55 = dma.vmem_to_hbm [thread:$0]  %s51_s19, 128, %s53_s22, [#allocation4]  }
  0x12   :  { %142 = dma.done.wait [#allocation4], 128  }
  0x13   :  { %143 = vsyncadd [#allocation4], 4294967168 }
  0x14   :  { %60 = vsyncpa [#allocation3], 1 }
  0x15   :  { %61 = vsyncpa [#allocation6], 1 }
  0x16   :  { %62 = vsyncpa [#allocation4], 1 }

</bundles_post_ra>
